<compile_context>
chip_gen: v7x
topology: tpu7x:2x2x1
jax: 0.10.0
libtpu: 0.0.40
codegen_flags: <defaults>
</compile_context>

<pallas_src>
import functools
import math

import jax
import jax.numpy as jnp
from jax.experimental import pallas as pl
from jax.experimental.pallas import tpu as pltpu


def _round_up(a: int, b: int) -> int:
    return (a + b - 1) // b * b


def _cdiv(a: int, b: int) -> int:
    return -(-a // b)


def _tpu_defaults():
    """Best-effort generation-aware tuning: (MXU tile, vmem limit, max L tile)."""
    vmem_phys = 128 * 1024 * 1024
    try:
        info = pltpu.get_tpu_info()
        vmem_phys = int(getattr(info, "vmem_capacity_bytes", vmem_phys))
    except Exception:
        pass
    kind = ""
    try:
        kind = jax.devices()[0].device_kind.lower()
    except Exception:
        pass
    # v5e and older generations have 128x128 MXUs; v6e/v7x are 256x256.
    mxu = 128 if any(t in kind for t in ("v2", "v3", "v4", "v5")) else 256
    # Leave double-buffering headroom under physical VMEM (v7x: 64 MiB/TC).
    vmem_limit = min(vmem_phys * 3 // 4, 110 * 1024 * 1024)
    l_tile_max = 2048 if vmem_limit >= 80 * 1024 * 1024 else 1024
    return mxu, vmem_limit, l_tile_max


def _conv_kernel(x_ref, w_ref, b_ref, o_ref, acc_ref, *, kh, kw, wp, l_tile):
    """One (batch, L-tile, Cout-tile, Cin-chunk) grid step.

    x_ref:   [C_CHUNK, TILE_EXT]          bf16 halo'd flat-spatial window
    w_ref:   [COUT_TILE, KH*KW*C_CHUNK]   bf16 weights, taps folded into K
    b_ref:   [COUT_TILE, 1]               float32 bias column
    o_ref:   [COUT_TILE, L_TILE]          output tile (lane dense, 128-aligned)
    acc_ref: [COUT_TILE, L_TILE]          float32 VMEM scratch accumulator
    """
    kc = pl.program_id(3)  # Cin-chunk (innermost reduction axis)

    @pl.when(kc == 0)
    def _init():
        acc_ref[...] = jnp.zeros_like(acc_ref)

    # Fold every (kh, kw) tap of this Cin chunk into one deep contraction.
    # All slice offsets are static Python ints (the DMA already positioned the
    # halo'd window), so the loads are plain shifted reads of the ref.
    taps = []
    for i in range(kh):
        for j in range(kw):
            s = i * wp + j                       # static flat-spatial tap shift
            taps.append(x_ref[:, s:s + l_tile])  # [C_CHUNK, L_TILE]
    patch = jnp.concatenate(taps, axis=0)        # [KH*KW*C_CHUNK, L_TILE]

    # Single deep MXU matmul per step, accumulated in float32.
    acc_ref[...] += jnp.dot(w_ref[...], patch,
                            preferred_element_type=jnp.float32)

    @pl.when(kc == pl.num_programs(3) - 1)
    def _finalize():
        o_ref[...] = (acc_ref[...] + b_ref[...]).astype(o_ref.dtype)


@functools.partial(jax.jit, static_argnames=("stride", "padding"))
def conv2d_pallas(x, weights, bias=None, *, stride=1, padding=0):
    """Conv2D forward matching the PyTorch reference module (NCHW)."""
    s_h, s_w = (stride, stride) if isinstance(stride, int) else stride
    p_h, p_w = (padding, padding) if isinstance(padding, int) else padding

    batch, cin, h_in, w_in = x.shape
    cout, cin_w, kh, kw = weights.shape
    assert cin == cin_w

    hp, wp = h_in + 2 * p_h, w_in + 2 * p_w
    assert hp >= kh and wp >= kw
    ho = (hp - kh) // s_h + 1
    wo = (wp - kw) // s_w + 1
    ho_full = hp - kh + 1                  # stride-1 output row positions
    l_full = ho_full * wp                  # dense flat-spatial output length

    mxu, vmem_limit, l_tile_max = _tpu_defaults()
    out_dtype = x.dtype
    cdtype = jnp.bfloat16                  # MXU operand dtype (f32 accumulate)

    # ---- channel / Cout / spatial tiling -----------------------------------
    cin_p = _round_up(cin, 16)                         # bf16 sublane packing
    # Aim for >= ~512 contraction rows per step (KH*KW taps folded in).
    c_chunk = min(cin_p, max(16, _round_up(_cdiv(512, kh * kw), 16)))
    cin_p = _round_up(cin_p, c_chunk)
    n_kc = cin_p // c_chunk
    k_step = kh * kw * c_chunk                         # contraction depth/step

    cout_tile = min(_round_up(cout, 8), mxu)           # MXU-native Cout tile
    cout_p = _round_up(cout, cout_tile)
    n_co = cout_p // cout_tile

    l_tile = min(_round_up(l_full, 128), l_tile_max)   # 128-aligned lanes
    n_l = _cdiv(l_full, l_tile)
    l_pad = n_l * l_tile

    # ---- single fused pad + bf16 cast + flatten pass ------------------------
    halo = (kh - 1) * wp + (kw - 1)
    tile_ext = l_tile + halo                           # per-tile window length
    needed = (n_l - 1) * l_tile + tile_ext             # flat length required
    extra_rows = max(0, _cdiv(needed - hp * wp, wp)) if needed > hp * wp else 0
    x_p = jnp.pad(x.astype(cdtype),
                  ((0, 0), (0, cin_p - cin),
                   (p_h, p_h + extra_rows), (p_w, p_w)))
    p_len = (hp + extra_rows) * wp
    x_flat = x_p.reshape(batch, cin_p, p_len)          # free row-major reshape

    # Halo'd L-tile windows: [B, n_l, Cin_p, TILE_EXT] (duplication = halo/L_TILE).
    x_tiles = jnp.stack(
        [x_flat[:, :, l * l_tile: l * l_tile + tile_ext] for l in range(n_l)],
        axis=1)

    # Weights: [Cout, Cin, KH, KW] -> [n_kc, Cout_p, KH*KW*C_CHUNK]
    # with contraction row ordering (tap-major, channel-minor) to match the
    # in-kernel patch build.
    w_p = jnp.pad(weights.astype(cdtype),
                  ((0, cout_p - cout), (0, cin_p - cin), (0, 0), (0, 0)))
    w_chunks = (w_p.reshape(cout_p, n_kc, c_chunk, kh, kw)
                   .transpose(1, 0, 3, 4, 2)
                   .reshape(n_kc, cout_p, k_step))

    if bias is None:
        b2d = jnp.zeros((cout_p, 1), dtype=jnp.float32)
    else:
        b2d = jnp.pad(bias.astype(jnp.float32),
                      (0, cout_p - cout)).reshape(cout_p, 1)

    flops = 2 * batch * cout_p * kh * kw * cin_p * l_pad
    bytes_accessed = (batch * n_co * n_l * cin_p * tile_ext * 2      # bf16 act
                      + batch * n_l * cout_p * kh * kw * cin_p * 2   # bf16 w
                      + cout_p * 4
                      + batch * cout_p * l_pad * jnp.dtype(out_dtype).itemsize)

    kernel = functools.partial(_conv_kernel, kh=kh, kw=kw, wp=wp, l_tile=l_tile)

    out_flat = pl.pallas_call(
        kernel,
        out_shape=jax.ShapeDtypeStruct((batch, cout_p, l_pad), out_dtype),
        grid_spec=pltpu.PrefetchScalarGridSpec(
            num_scalar_prefetch=0,
            grid=(batch, n_l, n_co, n_kc),
            in_specs=[
                # Halo'd flat-spatial window, channel-chunked by the DMA.
                pl.BlockSpec((None, None, c_chunk, tile_ext),
                             lambda b, l, co, kc: (b, l, kc, 0)),
                # Per-chunk, per-Cout-tile weight block (all taps folded in K).
                pl.BlockSpec((None, cout_tile, k_step),
                             lambda b, l, co, kc: (kc, co, 0)),
                # f32 bias column for this Cout tile.
                pl.BlockSpec((cout_tile, 1),
                             lambda b, l, co, kc: (co, 0)),
            ],
            out_specs=pl.BlockSpec((None, cout_tile, l_tile),
                                   lambda b, l, co, kc: (b, co, l)),
            scratch_shapes=[pltpu.VMEM((cout_tile, l_tile), jnp.float32)],
        ),
        compiler_params=pltpu.CompilerParams(
            dimension_semantics=("parallel", "parallel", "parallel",
                                 "arbitrary"),
            vmem_limit_bytes=vmem_limit),
        cost_estimate=pl.CostEstimate(flops=flops, transcendentals=0,
                                      bytes_accessed=bytes_accessed),
    )(x_tiles, w_chunks, b2d)

    # [B, Cout_p, L_pad] -> NCHW: crop channel / L padding, drop the KW-1
    # cross-row garbage columns, apply the stride by subsampling.
    out = out_flat[:, :cout, :l_full].reshape(batch, cout, ho_full, wp)
    out = out[:, :, ::s_h, ::s_w][:, :, :ho, :wo]
    return out


def xavier_normal_init(key, out_ch, in_ch, kh, kw, dtype=jnp.float32):
    """Matches Conv2D.init_weights(uniform=False): N(0, sqrt(2/(fan_in+fan_out)))."""
    fan_in = in_ch * kh * kw
    fan_out = out_ch * kh * kw
    std = math.sqrt(2.0 / (fan_in + fan_out))
    w = std * jax.random.normal(key, (out_ch, in_ch, kh, kw), dtype=dtype)
    b = jnp.zeros((out_ch,), dtype=dtype)
    return w, b


if __name__ == "__main__":
    key = jax.random.PRNGKey(0)
    kx, kw_ = jax.random.split(key)

    # Small deterministic example consistent with the module's forward.
    B, Cin, H, W = 2, 4, 16, 16
    Cout, KH, KW = 8, 3, 3
    stride, padding = 1, 1

    x = jax.random.normal(kx, (B, Cin, H, W), dtype=jnp.float32)
    weights, bias = xavier_normal_init(kw_, Cout, Cin, KH, KW)
    # Make bias nonzero so the in-kernel f32 bias path is exercised.
    bias = bias + 0.1 * jnp.arange(Cout, dtype=jnp.float32)

    out = conv2d_pallas(x, weights, bias, stride=stride, padding=padding)
    out = jax.block_until_ready(out)
    assert out.shape == (B, Cout, H, W), out.shape

    # Reference in the same precision regime as the kernel (bf16 operands,
    # float32 accumulation), mirroring the module's autocast forward.
    xb = x.astype(jnp.bfloat16)
    wb = weights.astype(jnp.bfloat16)
    ref = jax.lax.conv_general_dilated(
        xb, wb, window_strides=(stride, stride),
        padding=((padding, padding), (padding, padding)),
        dimension_numbers=("NCHW", "OIHW", "NCHW"),
        preferred_element_type=jnp.float32,
    ) + bias[None, :, None, None]

    max_err = float(jnp.max(jnp.abs(out - ref)))
    assert jnp.allclose(out, ref, atol=5e-3, rtol=5e-3), max_err

    print("KERNEL_OK")
</pallas_src>

<mosaic_0001>
module attributes {stable_mosaic.version = 11 : i64} {
  func.func @_conv_kernel(%arg0: i32, %arg1: i32, %arg2: i32, %arg3: i32, %arg4: memref<1x1x16x422xbf16, #tpu.memory_space<vmem>>, %arg5: memref<1x8x144xbf16, #tpu.memory_space<vmem>>, %arg6: memref<8x1xf32, #tpu.memory_space<vmem>>, %arg7: memref<1x8x384xf32, #tpu.memory_space<vmem>>, %arg8: memref<8x384xf32, #tpu.memory_space<vmem>>) attributes {dimension_semantics = [#tpu.dimension_semantics<parallel>, #tpu.dimension_semantics<parallel>, #tpu.dimension_semantics<parallel>, #tpu.dimension_semantics<arbitrary>], iteration_bounds = array<i64: 2, 1, 1, 1>, scalar_prefetch = 0 : i64, scratch_operands = 1 : i64, tpu.core_type = #tpu.core_type<tc>, window_params = [{transform_indices = @transform_0, window_bounds = array<i64: 1, 1, 16, 422>}, {transform_indices = @transform_1, window_bounds = array<i64: 1, 8, 144>}, {transform_indices = @transform_2, window_bounds = array<i64: 8, 1>}, {transform_indices = @transform_3, window_bounds = array<i64: 1, 8, 384>}]} {
    %c0_i32 = arith.constant 0 : i32
    %0 = arith.cmpi eq, %arg3, %c0_i32 : i32
    %1 = arith.extui %0 : i1 to i32
    %c0_i32_0 = arith.constant 0 : i32
    %2 = arith.cmpi ne, %1, %c0_i32_0 : i32
    scf.if %2 {
      %cst_37 = arith.constant 0.000000e+00 : f32
      %31 = vector.broadcast %cst_37 : f32 to vector<8x384xf32>
      %c0_38 = arith.constant 0 : index
      %c0_39 = arith.constant 0 : index
      %32 = vector.load %arg8[%c0_38, %c0_39] : memref<8x384xf32, #tpu.memory_space<vmem>>, vector<8x384xf32>
      tpu.vector_store %arg8[%c0_38, %c0_39], %31 {strides = array<i32>} : memref<8x384xf32, #tpu.memory_space<vmem>>, vector<8x384xf32>,
    } else {
    }
    %c0 = arith.constant 0 : index
    %c0_1 = arith.constant 0 : index
    %c0_2 = arith.constant 0 : index
    %c0_3 = arith.constant 0 : index
    %3 = vector.load %arg4[%c0, %c0_1, %c0_2, %c0_3] : memref<1x1x16x422xbf16, #tpu.memory_space<vmem>>, vector<1x1x16x384xbf16>
    %4 = vector.shape_cast %3 : vector<1x1x16x384xbf16> to vector<16x384xbf16>
    %c0_4 = arith.constant 0 : index
    %c0_5 = arith.constant 0 : index
    %c0_6 = arith.constant 0 : index
    %c1 = arith.constant 1 : index
    %5 = vector.load %arg4[%c0_4, %c0_5, %c0_6, %c1] : memref<1x1x16x422xbf16, #tpu.memory_space<vmem>>, vector<1x1x16x384xbf16>
    %6 = vector.shape_cast %5 : vector<1x1x16x384xbf16> to vector<16x384xbf16>
    %c0_7 = arith.constant 0 : index
    %c0_8 = arith.constant 0 : index
    %c0_9 = arith.constant 0 : index
    %c2 = arith.constant 2 : index
    %7 = vector.load %arg4[%c0_7, %c0_8, %c0_9, %c2] : memref<1x1x16x422xbf16, #tpu.memory_space<vmem>>, vector<1x1x16x384xbf16>
    %8 = vector.shape_cast %7 : vector<1x1x16x384xbf16> to vector<16x384xbf16>
    %c0_10 = arith.constant 0 : index
    %c0_11 = arith.constant 0 : index
    %c0_12 = arith.constant 0 : index
    %c18 = arith.constant 18 : index
    %9 = vector.load %arg4[%c0_10, %c0_11, %c0_12, %c18] : memref<1x1x16x422xbf16, #tpu.memory_space<vmem>>, vector<1x1x16x384xbf16>
    %10 = vector.shape_cast %9 : vector<1x1x16x384xbf16> to vector<16x384xbf16>
    %c0_13 = arith.constant 0 : index
    %c0_14 = arith.constant 0 : index
    %c0_15 = arith.constant 0 : index
    %c19 = arith.constant 19 : index
    %11 = vector.load %arg4[%c0_13, %c0_14, %c0_15, %c19] : memref<1x1x16x422xbf16, #tpu.memory_space<vmem>>, vector<1x1x16x384xbf16>
    %12 = vector.shape_cast %11 : vector<1x1x16x384xbf16> to vector<16x384xbf16>
    %c0_16 = arith.constant 0 : index
    %c0_17 = arith.constant 0 : index
    %c0_18 = arith.constant 0 : index
    %c20 = arith.constant 20 : index
    %13 = vector.load %arg4[%c0_16, %c0_17, %c0_18, %c20] : memref<1x1x16x422xbf16, #tpu.memory_space<vmem>>, vector<1x1x16x384xbf16>
    %14 = vector.shape_cast %13 : vector<1x1x16x384xbf16> to vector<16x384xbf16>
    %c0_19 = arith.constant 0 : index
    %c0_20 = arith.constant 0 : index
    %c0_21 = arith.constant 0 : index
    %c36 = arith.constant 36 : index
    %15 = vector.load %arg4[%c0_19, %c0_20, %c0_21, %c36] : memref<1x1x16x422xbf16, #tpu.memory_space<vmem>>, vector<1x1x16x384xbf16>
    %16 = vector.shape_cast %15 : vector<1x1x16x384xbf16> to vector<16x384xbf16>
    %c0_22 = arith.constant 0 : index
    %c0_23 = arith.constant 0 : index
    %c0_24 = arith.constant 0 : index
    %c37 = arith.constant 37 : index
    %17 = vector.load %arg4[%c0_22, %c0_23, %c0_24, %c37] : memref<1x1x16x422xbf16, #tpu.memory_space<vmem>>, vector<1x1x16x384xbf16>
    %18 = vector.shape_cast %17 : vector<1x1x16x384xbf16> to vector<16x384xbf16>
    %c0_25 = arith.constant 0 : index
    %c0_26 = arith.constant 0 : index
    %c0_27 = arith.constant 0 : index
    %c38 = arith.constant 38 : index
    %19 = vector.load %arg4[%c0_25, %c0_26, %c0_27, %c38] : memref<1x1x16x422xbf16, #tpu.memory_space<vmem>>, vector<1x1x16x384xbf16>
    %20 = vector.shape_cast %19 : vector<1x1x16x384xbf16> to vector<16x384xbf16>
    %21 = tpu.concatenate %4, %6, %8, %10, %12, %14, %16, %18, %20 in 0 : vector<16x384xbf16>, vector<16x384xbf16>, vector<16x384xbf16>, vector<16x384xbf16>, vector<16x384xbf16>, vector<16x384xbf16>, vector<16x384xbf16>, vector<16x384xbf16>, vector<16x384xbf16> -> vector<144x384xbf16>
    %c0_28 = arith.constant 0 : index
    %c0_29 = arith.constant 0 : index
    %22 = vector.load %arg8[%c0_28, %c0_29] : memref<8x384xf32, #tpu.memory_space<vmem>>, vector<8x384xf32>
    %c0_30 = arith.constant 0 : index
    %c0_31 = arith.constant 0 : index
    %c0_32 = arith.constant 0 : index
    %23 = vector.load %arg5[%c0_30, %c0_31, %c0_32] : memref<1x8x144xbf16, #tpu.memory_space<vmem>>, vector<1x8x144xbf16>
    %24 = vector.shape_cast %23 : vector<1x8x144xbf16> to vector<8x144xbf16>
    %cst = arith.constant dense<0.000000e+00> : vector<8x384xf32>
    %25 = tpu.matmul %24, %21, %cst {dimension_numbers = #tpu.dot_dimension_numbers<[1], [0], [0], [1], [0, 0, 1, 1], [], []>} : vector<8x144xbf16>, vector<144x384xbf16>, vector<8x384xf32> -> vector<8x384xf32>
    %26 = arith.addf %22, %25 : vector<8x384xf32>
    %c0_33 = arith.constant 0 : index
    %c0_34 = arith.constant 0 : index
    %27 = vector.load %arg8[%c0_33, %c0_34] : memref<8x384xf32, #tpu.memory_space<vmem>>, vector<8x384xf32>
    tpu.vector_store %arg8[%c0_33, %c0_34], %26 {strides = array<i32>} : memref<8x384xf32, #tpu.memory_space<vmem>>, vector<8x384xf32>,
    %c0_i32_35 = arith.constant 0 : i32
    %28 = arith.cmpi eq, %arg3, %c0_i32_35 : i32
    %29 = arith.extui %28 : i1 to i32
    %c0_i32_36 = arith.constant 0 : i32
    %30 = arith.cmpi ne, %29, %c0_i32_36 : i32
    scf.if %30 {
      %c0_37 = arith.constant 0 : index
      %c0_38 = arith.constant 0 : index
      %31 = vector.load %arg8[%c0_37, %c0_38] : memref<8x384xf32, #tpu.memory_space<vmem>>, vector<8x384xf32>
      %c0_39 = arith.constant 0 : index
      %c0_40 = arith.constant 0 : index
      %32 = vector.load %arg6[%c0_39, %c0_40] : memref<8x1xf32, #tpu.memory_space<vmem>>, vector<8x1xf32>
      %33 = vector.broadcast %32 : vector<8x1xf32> to vector<8x384xf32>
      %34 = arith.addf %31, %33 : vector<8x384xf32>
      %c0_41 = arith.constant 0 : index
      %c0_42 = arith.constant 0 : index
      %c0_43 = arith.constant 0 : index
      %35 = vector.load %arg7[%c0_41, %c0_42, %c0_43] : memref<1x8x384xf32, #tpu.memory_space<vmem>>, vector<1x8x384xf32>
      %36 = vector.shape_cast %35 : vector<1x8x384xf32> to vector<8x384xf32>
      %37 = vector.shape_cast %34 : vector<8x384xf32> to vector<1x8x384xf32>
      tpu.vector_store %arg7[%c0_41, %c0_42, %c0_43], %37 {strides = array<i32>} : memref<1x8x384xf32, #tpu.memory_space<vmem>>, vector<1x8x384xf32>,
    } else {
    }
    return
  }
  func.func @transform_0(%arg0: i32, %arg1: i32, %arg2: i32, %arg3: i32) -> (i32, i32, i32, i32) {
    %c0_i32 = arith.constant 0 : i32
    %c0_i32_0 = arith.constant 0 : i32
    return %arg0, %arg1, %arg3, %c0_i32 : i32, i32, i32, i32
  }
  func.func @transform_1(%arg0: i32, %arg1: i32, %arg2: i32, %arg3: i32) -> (i32, i32, i32) {
    %c0_i32 = arith.constant 0 : i32
    %c0_i32_0 = arith.constant 0 : i32
    return %arg3, %arg2, %c0_i32 : i32, i32, i32
  }
  func.func @transform_2(%arg0: i32, %arg1: i32, %arg2: i32, %arg3: i32) -> (i32, i32) {
    %c0_i32 = arith.constant 0 : i32
    %c0_i32_0 = arith.constant 0 : i32
    return %arg2, %c0_i32 : i32, i32
  }
  func.func @transform_3(%arg0: i32, %arg1: i32, %arg2: i32, %arg3: i32) -> (i32, i32, i32) {
    %c0_i32 = arith.constant 0 : i32
    return %arg0, %arg2, %arg1 : i32, i32, i32
  }
}

</mosaic_0001>

<bundles_post_ra>
// kernel: conv2d_pallas.1
= control target key start
LH: loop header
LB: loop body
LE: loop exit
PB: predicated region body
PF: predicated region fallthrough
CT: control target
= control target key end

     0   :  { %8 = vsyncpa [#allocation4], 0  ;;  %s1294_s0 = inlined_call_operand.hbm [shape: bf16[2,1,16,422], index: 0, kind: input, shape index: {}]   ;;  %s1295_s1 = inlined_call_operand.hbm [shape: bf16[1,8,144], index: 1, kind: input, shape index: {}]   ;;  %s1296_s2 = inlined_call_operand.hbm [shape: f32[8,1], index: 2, kind: input, shape index: {}]   ;;  %s1297_s3 = inlined_call_operand.hbm [shape: f32[2,8,384], index: 3, kind: output, shape index: {}]  }
   0x1   :  { %10 = vsyncpa [#allocation4 + $0x1], 0 }
   0x2   :  { %11 = vsyncpa [#allocation7], 0 }
   0x3   :  { %12 = vsyncpa [#allocation5], 0 }
   0x4   :  { %14 = vsyncpa [#allocation5 + $0x1], 0  ;;  %s1031_s12 = smov 0   ;;  %s1033_s13 = smov 0  }
   0x5   :  { %s1035_s14 = smov 0   ;;  %s1037_s15 = smov 0  }
   0x6   :  { %s1039_s16 = smov 0   ;;  %s1041_s17 = smov 0  }
   0x7 LB: > { %s690_s18 = sadd.s32 4294967295, %s994_s17   ;;  %s691_s19 = sadd.s32 4294967294, %s994_s17   ;;  %s994_s17 = sphi %s1041_s17, %s20_s17   ;;  %s990_s16 = sphi %s1039_s16, %s1323_s16   ;;  %s986_s15 = sphi %s1037_s15, %s1322_s15   ;;  %s982_s14 = sphi %s1035_s14, %s1321_s14   ;;  %s978_s13 = sphi %s1033_s13, %s1320_s13   ;;  %s974_s12 = sphi %s1031_s12, %s1319_s12  }
   0x8   : > { %s57_s20 = sadd.s32 1, %s982_s14  ;;  %p64_p0 = scmp.ne.s32.totalorder %s982_s14, %s978_s13 }
   0x9   : > { %p65_p1 = scmp.eq.s32.totalorder %s994_s17, 0  ;;  %p70_p2 = scmp.ne.s32.totalorder %s978_s13, %s974_s12 }
   0xa   : > { %p1069_p3 = scmp.eq.s32.totalorder %s690_s18, 0  ;;  %p152_p4 = scmp.eq.s32.totalorder %s690_s18, 1 }
   0xb   : > { %p1073_p5 = por %p65_p1, %p64_p0  ;;  %p158_p6 = scmp.eq.s32.totalorder %s691_s19, 1 }
   0xc   : > { %s1304_s21 = scalar_select %p1069_p3, 1, 0 }
   0xd   : > { %p1079_p7 = por %p1069_p3, %p70_p2  ;;  %p1083_p8 = por %p152_p4, %p64_p0 }
   0xe   : > { %p1087_p9 = por %p158_p6, %p70_p2  ;;  %p692_p10 = scmp.ge.s32.totalorder %s994_s17, 1 }
   0xf   : > { %s1306_s23 = scalar_select %p1079_p7, 1, 0 }
  0x10   : > { %s1307_s24 = scalar_select %p1083_p8, 1, 0 }
  0x11   : > { %s1308_s25 = scalar_select %p1087_p9, 1, 0 }
  0x12   : > { %p165_p11 = scmp.lt.s32.totalorder %s994_s17, 3  ;;  %s996_s27 = smov [#allocation6]  }
  0x13   : > { %s183_s28 = sshll.u32 %s996_s27, 4  ;;  %p747_p1 = scmp.lt.s32.totalorder %s994_s17, 2  ;;  %s184_s28 = int_to_ptr.vmem [resolvable:$true] %s183_s28 }
  0x14   : > { %p1094_p13 = pnand %p692_p10, %p165_p11  ;;  %s997_s30 = smov [#allocation8]  }
  0x15   : > { %p1103_p4 = pnand %p747_p1, %p1073_p5  ;;  %s196_s4 = sshll.u32 %s997_s30, 4  ;;  %s1113_s4 = int_to_ptr.vmem [resolvable:$true] %s196_s4 }
  0x16   : > { %s1309_s26 = scalar_select %p1094_p13, 1, 0 }
  0x17   : > { %p730_p0 = pneg %p1094_p13  ;;  %s822_s8 = scalar_lea.hbm %s1295_s1, 128 }
  0x18   : > { %s1310_s29 = scalar_select %p1103_p4, 1, 0 }
  0x19   : > { %p1109_p2 = pnand %p730_p0, %p1069_p3  ;;  %p823_p5 = scmp.ne.s32.totalorder %s1295_s1, %s822_s8 }
  0x1a   : > { %p829_p1 = scmp.lt.u32.totalorder %s822_s8, %s1295_s1 }
  0x1b   : > { %p824_p6 = pneg %p1109_p2 }
  0x1d   : > { %p825_p10 = pnand %p824_p6, %p823_p5 }
  0x1f   : > { %p826_p11 = pneg %p825_p10 }
  0x21   : > { %p831_p0 = pnand %p829_p1, %p826_p11 }
  0x23   : > { %834 = shalt.err (!%p831_p0)
}
  0x24   : > { %s835_s19 = scalar_lea.vmem %s184_s28, 128  ;;  %p843_p3 = scmp.lt.s32.totalorder %s184_s28, %s184_s28 }
  0x25   : > { %p836_p12 = scmp.ne.s32.totalorder %s184_s28, %s835_s19  ;;  %p844_p7 = scmp.lt.s32.totalorder %s835_s19, %s835_s19 }
  0x27   : > { %p838_p9 = pnand %p836_p12, %p824_p6  ;;  %p845_p13 = por %p844_p7, %p843_p3 }
  0x29   : > { %p839_p8 = pneg %p838_p9 }
  0x2b   : > { %p846_p4 = pnand %p845_p13, %p839_p8 }
  0x2d   : > { %849 = shalt.err (!%p846_p4)
}
  0x2e   : > { %733 = dma.hbm_to_vmem [thread:$0]  (!%p1109_p2), %s1295_s1, 128, %s184_s28, [#allocation7]  }
  0x2f   : > { %s850_s7 = scalar_lea.hbm %s1296_s2, 128 }
  0x30   : > { %p851_p9 = scmp.ne.s32.totalorder %s1296_s2, %s850_s7  ;;  %p857_p8 = scmp.lt.u32.totalorder %s850_s7, %s1296_s2 }
  0x32   : > { %p853_p3 = pnand %p851_p9, %p824_p6 }
  0x34   : > { %p854_p7 = pneg %p853_p3 }
  0x36   : > { %p859_p12 = pnand %p857_p8, %p854_p7 }
  0x38   : > { %862 = shalt.err (!%p859_p12)
}
  0x39   : > { %s863_s28 = scalar_lea.vmem %s1113_s4, 128  ;;  %p871_p10 = scmp.lt.s32.totalorder %s1113_s4, %s1113_s4 }
  0x3a   : > { %p864_p13 = scmp.ne.s32.totalorder %s1113_s4, %s863_s28  ;;  %p872_p11 = scmp.lt.s32.totalorder %s863_s28, %s863_s28 }
  0x3c   : > { %p866_p4 = pnand %p864_p13, %p824_p6  ;;  %p873_p1 = por %p872_p11, %p871_p10 }
  0x3e   : > { %p867_p5 = pneg %p866_p4 }
  0x40   : > { %p874_p0 = pnand %p873_p1, %p867_p5 }
  0x42   : > { %877 = shalt.err (!%p874_p0)
}
  0x43   : > { %736 = dma.hbm_to_vmem [thread:$0]  (!%p1109_p2), %s1296_s2, 128, %s1113_s4, [#allocation7]  }
  0x44   : > { %s46_s22 = sadd.s32 1, %s990_s16  ;;  %s207_s27 = sand.u32 1, %s982_s14  }
  0x45   : > { %p48_p6 = scmp.ge.s32.totalorder %s46_s22, 2  ;;  %s696_s30 = sshll.u32 %s207_s27, 5 }
  0x46   : > { %s715_s6 = sshll.u32 %s990_s16, 9  ;;  %s211_s4 = scalar_lea.vmem [#allocation3], %s696_s30 }
  0x47   : > { %s1325_s22 = smov (%p48_p6, %s46_s22), 0  ;;  %s1170_s8 = scalar_lea.hbm %s1294_s0, %s715_s6 }
  0x48   : > { %s50_s9 = ssub.s32 %s990_s16, %s1325_s22  ;;  %s223_s10 = sshll.u32 %s211_s4, 4  ;;  %s1174_s10 = int_to_ptr.vmem [resolvable:$true] %s223_s10 }
  0x49   : > { %p55_p2 = scmp.eq.s32.totalorder %s50_s9, 0  ;;  %s1181_s28 = scalar_lea.sflag [#allocation4], %s207_s27 }
  0x4a   : > { %s878_s18 = scalar_lea.hbm %s1170_s8, 512  ;;  %p1312_p3 = scmp.ne.s32.totalorder %s1310_s29, 0 }
  0x4b   : > { %s1179_s11 = scalar_select %p55_p2, %s982_s14, %s57_s20  }
  0x4c   : > { %p879_p9 = scmp.ne.s32.totalorder %s1170_s8, %s878_s18  ;;  %p880_p7 = pneg %p1312_p3 }
  0x4d   : > { %s883_s30 = scalar_lea.hbm %s1294_s0, 1024  ;;  %p884_p13 = scmp.lt.u32.totalorder %s1170_s8, %s1294_s0 }
  0x4e   : > { %p881_p8 = pnand %p880_p7, %p879_p9  ;;  %p885_p4 = scmp.lt.u32.totalorder %s883_s30, %s878_s18 }
  0x4f   : > { %p887_p10 = scmp.lt.u32.totalorder %s878_s18, %s1170_s8 }
  0x50   : > { %p882_p12 = pneg %p881_p8  ;;  %p886_p5 = por %p885_p4, %p884_p13 }
  0x52   : > { %p888_p11 = por %p887_p10, %p886_p5 }
  0x54   : > { %p889_p1 = pnand %p888_p11, %p882_p12 }
  0x56   : > { %892 = shalt.err (!%p889_p1)
}
  0x57   : > { %s893_s20 = scalar_lea.vmem %s1174_s10, 512  ;;  %s998_s27 = smov [#allocation3]  }
  0x58   : > { %p894_p0 = scmp.ne.s32.totalorder %s1174_s10, %s893_s20  ;;  %s898_s9 = sshll.u32 %s998_s27, 4  ;;  %s899_s9 = int_to_ptr.vmem [resolvable:$false] %s898_s9 }
  0x59   : > { %s900_s4 = scalar_lea.vmem %s899_s9, 1024  ;;  %p901_p9 = scmp.lt.s32.totalorder %s1174_s10, %s899_s9 }
  0x5a   : > { %p896_p6 = pnand %p894_p0, %p880_p7  ;;  %p902_p8 = scmp.lt.s32.totalorder %s900_s4, %s893_s20 }
  0x5c   : > { %p897_p2 = pneg %p896_p6  ;;  %p903_p13 = por %p902_p8, %p901_p9 }
  0x5e   : > { %p904_p4 = pnand %p903_p13, %p897_p2 }
  0x60   : > { %907 = shalt.err (!%p904_p4)
}
  0x61   : > { %s999_s18 = smov 256   ;;  %s1000_s19 = smov 16  }
  0x62   : > { %740 = dma.hbm_to_vmem [thread:$0]  (!%p1312_p3), %s1170_s8, 512, %s1174_s10, %s1181_s28, %s999_s18, %s999_s18, %s1000_s19  }
  0x63   : > { %p1313_p7 = scmp.ne.s32.totalorder %s1309_s26, 0 }
  0x64   : > { %s1212_s6 = sand.u32 (!%p1313_p7), 1, %s978_s13   ;;  %p1314_p12 = scmp.ne.s32.totalorder (!%p1313_p7), %s1306_s23, 0 }
  0x65   : > { %235 = sbr.rel (%p1313_p7) target bundleno = 522 (0x20a), region = 32  ;;  %s700_s30 = sshll.u32 (!%p1313_p7), %s1212_s6, 5 }
  0x66   : > { %s238_s5 = scalar_lea.sflag (!%p1313_p7), [#allocation4], %s1212_s6  ;;  %s241_s7 = scalar_lea.vmem (!%p1313_p7), [#allocation3], %s700_s30 }
  0x6c   : > { %961 = dma.done.wait (%p1314_p12), %s238_s5, 512  }
  0x6d   : > { %963 = vsyncadd (%p1314_p12), %s238_s5, 4294966784  ;;  %p1315_p5 = scmp.ne.s32.totalorder %s1304_s21, 0 }
  0x6f   : > { %965 = dma.done.wait (%p1315_p5), [#allocation7], 256  }
  0x70   : > { %967 = vsyncadd (%p1315_p5), [#allocation7], 4294967040  ;;  %v1001_v0 = vmov 0   ;;  %v813_v1 = vld [vmem:[%s241_s7 + $0x4] ss:$16 sps:$4 sm:$0xff]   ;;  %s1002_s26 = smov 127  }
  0x71   : > { %487 = vmatprep.subr.bf16.mxu1 %v1001_v0  ;;  %812 = vset.pattern.permute.xlu0 %v1001_v0  ;;  %v815_v2 = vld [vmem:[%s241_s7] ss:$16 sps:$4 sm:$0xff]   ;;  %v816_v3 = vld [vmem:[%s241_s7 + $0x8] ss:$16 sps:$4 sm:$0xff]   ;;  %v818_v4 = vld [vmem:[%s241_s7 + $0xc] ss:$16 sps:$4 sm:$0xff]  }
  0x72   : > { %314 = vrot.lane.b32.xlu0 %v813_v1, %s1002_s26  ;;  %446 = vmatprep.subr.bf16.mxu0 %v813_v1  ;;  %v819_v5 = vld [vmem:[%s241_s7 + $0x8] ss:$16 sps:$4 sm:$0xff]   ;;  %s1003_s21 = smov 126   ;;  %s1004_s23 = smov 110   ;;  %v1227_v6 = vld [vmem:[#allocation6] sm:$0xff]  ;;  %vm442_vm0 = vcmask 130048  }
  0x73   : > { %312 = vrot.lane.b32.xlu1 %v815_v2, %s1002_s26  ;;  %447 = vmatpush1.bf16.msra.mxu0 %v815_v2  ;;  %s1005_s29 = smov 109   ;;  %s1006_s8 = smov 108   ;;  %v709_v7 = vcombine.high %v1227_v6, %v1227_v6  ;;  %v539_v8 = vld [vmem:[#allocation8] sm:$0xff]  ;;  %vm320_vm1 = vcmask 1039360   ;;  %vm335_vm2 = vcmask 1031168   ;;  %vm350_vm3 = vcmask 900096  }
  0x74   : > { %488 = vmatpush1.bf16.msra.mxu1 %v819_v5  ;;  %s1007_s10 = smov 92   ;;  %s1008_s28 = smov 91   ;;  %vm365_vm4 = vcmask 891904   ;;  %vm380_vm5 = vcmask 883712   ;;  %vm395_vm6 = vcmask 752640   ;;  %vm410_vm7 = vcmask 744448  }
  0x75   : > { %489 = vmatprep.subr.bf16.mxu1 %v1001_v0  ;;  %710 = vmatprep.mubr.msk.bf16.mxu0 %vm442_vm0, %v709_v7  ;;  %s1009_s20 = smov 90   ;;  %vm425_vm8 = vcmask 736256   ;;  %s716_s27 = smul.u32 24, %s1212_s6 }
  0x76   : > { %316 = vrot.lane.b32.xlu0 %v816_v3, %s1002_s26  ;;  %711 = vmatprep.mubr.msk.bf16.mxu1 %vm442_vm0, %v709_v7  ;;  %s717_s9 = smul.u32 384, %s986_s15  ;;  %s552_s15 = scalar_lea.sflag [#allocation5], %s1212_s6 }
  0x77   : > { %318 = vrot.lane.b32.xlu1 %v818_v4, %s1002_s26  ;;  %s271_s4 = scalar_lea.vmem [#allocation9], %s716_s27  ;;  %p1316_p10 = scmp.ne.s32.totalorder %s1307_s24, 0 }
  0x78   : > { %s570_s18 = sshll.u32 %s271_s4, 4  ;;  %s1245_s5 = scalar_lea.hbm %s1297_s3, %s717_s9  ;;  %s1247_s18 = int_to_ptr.vmem [resolvable:$true] %s570_s18 }
  0x79   : > { %s908_s7 = scalar_lea.vmem %s1247_s18, 384  ;;  %s1010_s26 = smov [#allocation9]  }
  0x7a   : > { %329 = vrot.lane.b32.xlu0 %v813_v1, %s1003_s21  ;;  %p909_p3 = scmp.ne.s32.totalorder %s1247_s18, %s908_s7 }
  0x7b   : > { %331 = vrot.lane.b32.xlu1 %v816_v3, %s1003_s21 }
  0x7c   : > { %p910_p11 = pnand %p909_p3, %p1316_p10 }
  0x7e   : > { %327 = vrot.lane.b32.xlu0 %v815_v2, %s1003_s21  ;;  %p911_p1 = pneg %p910_p11 }
  0x7f   : > { %333 = vrot.lane.b32.xlu1 %v818_v4, %s1003_s21  ;;  %s912_s21 = sshll.u32 %s1010_s26, 4  ;;  %s913_s21 = int_to_ptr.vmem [resolvable:$false] %s912_s21 }
  0x80   : > { %p915_p0 = scmp.lt.s32.totalorder %s1247_s18, %s913_s21 }
  0x82   : > { %344 = vrot.lane.b32.xlu0 %v813_v1, %s1004_s23 }
  0x83   : > { %346 = vrot.lane.b32.xlu1 %v816_v3, %s1004_s23 }
  0x86   : > { %342 = vrot.lane.b32.xlu0 %v815_v2, %s1004_s23 }
  0x87   : > { %348 = vrot.lane.b32.xlu1 %v818_v4, %s1004_s23  ;;  %s914_s23 = scalar_lea.vmem %s913_s21, 768 }
  0x88   : > { %p916_p6 = scmp.lt.s32.totalorder %s914_s23, %s908_s7 }
  0x8a   : > { %359 = vrot.lane.b32.xlu0 %v813_v1, %s1005_s29  ;;  %p917_p2 = por %p916_p6, %p915_p0 }
  0x8b   : > { %361 = vrot.lane.b32.xlu1 %v816_v3, %s1005_s29 }
  0x8c   : > { %p918_p9 = pnand %p917_p2, %p911_p1 }
  0x8e   : > { %357 = vrot.lane.b32.xlu0 %v815_v2, %s1005_s29 }
  0x8f   : > { %363 = vrot.lane.b32.xlu1 %v818_v4, %s1005_s29 }
  0x92   : > { %374 = vrot.lane.b32.xlu0 %v813_v1, %s1006_s8 }
  0x93   : > { %376 = vrot.lane.b32.xlu1 %v816_v3, %s1006_s8 }
  0x96   : > { %372 = vrot.lane.b32.xlu0 %v815_v2, %s1006_s8 }
  0x97   : > { %378 = vrot.lane.b32.xlu1 %v818_v4, %s1006_s8 }
  0x9a   : > { %389 = vrot.lane.b32.xlu0 %v813_v1, %s1007_s10 }
  0x9b   : > { %391 = vrot.lane.b32.xlu1 %v816_v3, %s1007_s10 }
  0x9e   : > { %387 = vrot.lane.b32.xlu0 %v815_v2, %s1007_s10 }
  0x9f   : > { %393 = vrot.lane.b32.xlu1 %v818_v4, %s1007_s10 }
  0xa2   : > { %404 = vrot.lane.b32.xlu0 %v813_v1, %s1008_s28 }
  0xa3   : > { %406 = vrot.lane.b32.xlu1 %v816_v3, %s1008_s28 }
  0xa6   : > { %402 = vrot.lane.b32.xlu0 %v815_v2, %s1008_s28 }
  0xa7   : > { %408 = vrot.lane.b32.xlu1 %v818_v4, %s1008_s28 }
  0xaa   : > { %419 = vrot.lane.b32.xlu0 %v813_v1, %s1009_s20  ;;  %v708_v1 = vcombine.low %v1227_v6, %v1227_v6 }
  0xab   : > { %421 = vrot.lane.b32.xlu1 %v816_v3, %s1009_s20 }
  0xae   : > { %417 = vrot.lane.b32.xlu0 %v815_v2, %s1009_s20 }
  0xaf   : > { %423 = vrot.lane.b32.xlu1 %v818_v4, %s1009_s20 }
  0xb2   : > { %542 = vperm.xlu0 %812, %v539_v8  }
  0xe4   : > { %v315_v9 = vpop.permute.xlu0 %314 }
  0xe5   : > { %v313_v10 = vpop.permute.xlu1 %312 }
  0xe6   : > { %v321_v15 = vsel %vm320_vm1, %v313_v10, %v315_v9 }
  0xe8   : > { %v317_v11 = vpop.permute.xlu0 %316 }
  0xe9   : > { %v319_v12 = vpop.permute.xlu1 %318  ;;  %v322_v13 = vsel %vm320_vm1, %v315_v9, %v317_v11 }
  0xea   : > { %448 = vmatprep.subr.bf16.mxu0 %v322_v13  ;;  %v323_v14 = vsel %vm320_vm1, %v317_v11, %v319_v12 }
  0xeb   : > { %490 = vmatpush1.bf16.msra.mxu1 %v323_v14  ;;  %449 = vmatpush1.bf16.msra.mxu0 %v321_v15 }
  0xec   : > { %v330_v16 = vpop.permute.xlu0 %329  ;;  %491 = vmatprep.subr.bf16.mxu1 %v1001_v0 }
  0xed   : > { %v332_v17 = vpop.permute.xlu1 %331 }
  0xee   : > { %v337_v18 = vsel %vm335_vm2, %v330_v16, %v332_v17 }
  0xef   : > { %450 = vmatprep.subr.bf16.mxu0 %v337_v18 }
  0xf0   : > { %v328_v19 = vpop.permute.xlu0 %327 }
  0xf1   : > { %v334_v20 = vpop.permute.xlu1 %333  ;;  %v336_v21 = vsel %vm335_vm2, %v328_v19, %v330_v16 }
  0xf2   : > { %451 = vmatpush1.bf16.msra.mxu0 %v336_v21  ;;  %v338_v22 = vsel %vm335_vm2, %v332_v17, %v334_v20 }
  0xf3   : > { %492 = vmatpush1.bf16.msra.mxu1 %v338_v22 }
  0xf4   : > { %v345_v23 = vpop.permute.xlu0 %344  ;;  %493 = vmatprep.subr.bf16.mxu1 %v1001_v0 }
  0xf5   : > { %v347_v24 = vpop.permute.xlu1 %346 }
  0xf6   : > { %v352_v25 = vsel %vm350_vm3, %v345_v23, %v347_v24 }
  0xf7   : > { %452 = vmatprep.subr.bf16.mxu0 %v352_v25 }
  0xf8   : > { %v343_v26 = vpop.permute.xlu0 %342 }
  0xf9   : > { %v349_v27 = vpop.permute.xlu1 %348  ;;  %v351_v28 = vsel %vm350_vm3, %v343_v26, %v345_v23 }
  0xfa   : > { %453 = vmatpush1.bf16.msra.mxu0 %v351_v28  ;;  %v353_v29 = vsel %vm350_vm3, %v347_v24, %v349_v27 }
  0xfb   : > { %494 = vmatpush1.bf16.msra.mxu1 %v353_v29 }
  0xfc   : > { %v360_v30 = vpop.permute.xlu0 %359  ;;  %495 = vmatprep.subr.bf16.mxu1 %v1001_v0 }
  0xfd   : > { %v362_v31 = vpop.permute.xlu1 %361 }
  0xfe   : > { %v367_v32 = vsel %vm365_vm4, %v360_v30, %v362_v31 }
  0xff   : > { %454 = vmatprep.subr.bf16.mxu0 %v367_v32 }
 0x100   : > { %v358_v33 = vpop.permute.xlu0 %357 }
 0x101   : > { %v364_v34 = vpop.permute.xlu1 %363  ;;  %v366_v35 = vsel %vm365_vm4, %v358_v33, %v360_v30 }
 0x102   : > { %455 = vmatpush1.bf16.msra.mxu0 %v366_v35  ;;  %v368_v36 = vsel %vm365_vm4, %v362_v31, %v364_v34 }
 0x103   : > { %496 = vmatpush1.bf16.msra.mxu1 %v368_v36 }
 0x104   : > { %v375_v37 = vpop.permute.xlu0 %374  ;;  %497 = vmatprep.subr.bf16.mxu1 %v1001_v0 }
 0x105   : > { %v377_v38 = vpop.permute.xlu1 %376 }
 0x106   : > { %v382_v39 = vsel %vm380_vm5, %v375_v37, %v377_v38 }
 0x107   : > { %456 = vmatprep.subr.bf16.mxu0 %v382_v39 }
 0x108   : > { %v373_v40 = vpop.permute.xlu0 %372 }
 0x109   : > { %v379_v41 = vpop.permute.xlu1 %378  ;;  %v381_v42 = vsel %vm380_vm5, %v373_v40, %v375_v37 }
 0x10a   : > { %457 = vmatpush1.bf16.msra.mxu0 %v381_v42  ;;  %v383_v43 = vsel %vm380_vm5, %v377_v38, %v379_v41 }
 0x10b   : > { %498 = vmatpush1.bf16.msra.mxu1 %v383_v43 }
 0x10c   : > { %v390_v44 = vpop.permute.xlu0 %389  ;;  %499 = vmatprep.subr.bf16.mxu1 %v1001_v0 }
 0x10d   : > { %v392_v45 = vpop.permute.xlu1 %391 }
 0x10e   : > { %v397_v46 = vsel %vm395_vm6, %v390_v44, %v392_v45 }
 0x10f   : > { %458 = vmatprep.subr.bf16.mxu0 %v397_v46 }
 0x110   : > { %v388_v47 = vpop.permute.xlu0 %387 }
 0x111   : > { %v394_v48 = vpop.permute.xlu1 %393  ;;  %v396_v49 = vsel %vm395_vm6, %v388_v47, %v390_v44 }
 0x112   : > { %459 = vmatpush1.bf16.msra.mxu0 %v396_v49  ;;  %v398_v50 = vsel %vm395_vm6, %v392_v45, %v394_v48 }
 0x113   : > { %500 = vmatpush1.bf16.msra.mxu1 %v398_v50 }
 0x114   : > { %v405_v51 = vpop.permute.xlu0 %404  ;;  %501 = vmatprep.subr.bf16.mxu1 %v1001_v0 }
 0x115   : > { %v407_v52 = vpop.permute.xlu1 %406 }
 0x116   : > { %v412_v53 = vsel %vm410_vm7, %v405_v51, %v407_v52 }
 0x117   : > { %460 = vmatprep.subr.bf16.mxu0 %v412_v53 }
 0x118   : > { %v403_v54 = vpop.permute.xlu0 %402 }
 0x119   : > { %v409_v55 = vpop.permute.xlu1 %408  ;;  %v411_v56 = vsel %vm410_vm7, %v403_v54, %v405_v51 }
 0x11a   : > { %461 = vmatpush1.bf16.msra.mxu0 %v411_v56  ;;  %v413_v57 = vsel %vm410_vm7, %v407_v52, %v409_v55 }
 0x11b   : > { %502 = vmatpush1.bf16.msra.mxu1 %v413_v57 }
 0x11c   : > { %v420_v58 = vpop.permute.xlu0 %419  ;;  %503 = vmatprep.subr.bf16.mxu1 %v1001_v0 }
 0x11d   : > { %v422_v59 = vpop.permute.xlu1 %421 }
 0x11e   : > { %v427_v60 = vsel %vm425_vm8, %v420_v58, %v422_v59 }
 0x11f   : > { %462 = vmatprep.subr.bf16.mxu0 %v427_v60 }
 0x120   : > { %v418_v61 = vpop.permute.xlu0 %417 }
 0x121   : > { %v424_v62 = vpop.permute.xlu1 %423  ;;  %v426_v63 = vsel %vm425_vm8, %v418_v61, %v420_v58 }
 0x122   : > { %463 = vmatpush1.bf16.msra.mxu0 %v426_v63  ;;  %v428_v2 = vsel %vm425_vm8, %v422_v59, %v424_v62 }
 0x123   : > { %504 = vmatpush1.bf16.msra.mxu1 %v428_v2 }
 0x125   : > { %479 = vmatmul.mubr.bf16.vlgmr.msra.gmra.mrb[0].mxu0 %v708_v1 }
 0x126   : > { %520 = vmatmul.mubr.bf16.vlgmr.msra.gmra.mrb[0].mxu1 %v708_v1 }
 0x131   : > { %v543_v3 = vpop.permute.xlu0 %542 }
 0x1f8   : > { %v480_v0 = vpop.f32.mrb[0].mxu0 }
 0x1f9   : > { %v545_v4 = vadd.f32 %v543_v3, %v480_v0  ;;  %v521_v5 = vpop.f32.mrb[0].mxu1  ;;  %v482_v7 = vpop.f32.mrb[1].mxu0 }
 0x1fa   : > { %v547_v8 = vadd.f32 %v543_v3, %v521_v5  ;;  %v546_v9 = vadd.f32 %v543_v3, %v482_v7  ;;  %v523_v10 = vpop.f32.mrb[1].mxu1  ;;  %v484_v6 = vpop.f32.mrb[2].mxu0 }
 0x1fb   : > { %548 = vst [vmem:[%s271_s4] sm:$0xff] %v545_v4  ;;  %v524_v11 = vpop.f32.mrb[2].mxu1  ;;  %v485_v12 = vpop.f32.mrb[3].mxu0 }
 0x1fc   : > { %550 = vst [vmem:[%s271_s4 + $0x10] sm:$0xff] %v547_v8  ;;  %549 = vst [vmem:[%s271_s4 + $0x8] sm:$0xff] %v546_v9  ;;  %v525_v13 = vpop.f32.mrb[3].mxu1 }
 0x1fd   : > { %921 = shalt.err (!%p918_p9)
}
 0x1fe   : > { %s922_s6 = scalar_lea.hbm %s1245_s5, 384  ;;  %s926_s10 = scalar_lea.hbm %s1297_s3, 768 }
 0x1ff   : > { %p923_p8 = scmp.ne.s32.totalorder %s1245_s5, %s922_s6  ;;  %p927_p7 = scmp.lt.u32.totalorder %s1245_s5, %s1297_s3 }
 0x200   : > { %p928_p12 = scmp.lt.u32.totalorder %s926_s10, %s922_s6  ;;  %p930_p3 = scmp.lt.u32.totalorder %s922_s6, %s1245_s5 }
 0x201   : > { %p924_p13 = pnand %p923_p8, %p1316_p10 }
 0x202   : > { %p929_p5 = por %p928_p12, %p927_p7 }
 0x203   : > { %p925_p4 = pneg %p924_p13 }
 0x204   : > { %p931_p11 = por %p930_p3, %p929_p5 }
 0x206   : > { %p932_p1 = pnand %p931_p11, %p925_p4 }
 0x208   : > { %935 = shalt.err (!%p932_p1)
}
 0x209   : > { %728 = dma.vmem_to_hbm [thread:$0]  (%p1316_p10), %s1247_s18, 384, %s1245_s5, %s552_s15  }
 0x20a PF: > { %s582_s27 = sand.u32 1, %s974_s12   ;;  %p1317_p0 = scmp.ne.s32.totalorder %s1308_s25, 0 }
 0x20b   : > { %p1318_p6 = scmp.ge.s32.totalorder %s994_s17, 2  ;;  %s583_s9 = scalar_lea.sflag [#allocation5], %s582_s27 }
 0x20d   : > { %p742_p2 = pnand %p1318_p6, %p1317_p0 }
 0x20f   : > { %969 = dma.done.wait (!%p742_p2), %s583_s9, 384  }
 0x210   : > { %971 = vsyncadd (!%p742_p2), %s583_s9, 4294966912  ;;  %s20_s17 = sadd.s32 1, %s994_s17   ;;  %s1319_s12 = smov %s978_s13 }
 0x211   : > { %p17_p9 = scmp.ge.s32.totalorder %s20_s17, 4   ;;  %s1320_s13 = smov %s982_s14 }
 0x212   : > { %s1321_s14 = smov %s1179_s11  ;;  %s1322_s15 = smov %s990_s16 }
 0x213   : > { %s1323_s16 = smov %s1325_s22  ;;  %19 = sbr.rel (!%p17_p9) target bundleno = 7 (0x7), region = 95 }
 0x21a   :  { %588 = vsyncpa [#allocation4], 1 }
 0x21b   :  { %590 = vsyncpa [#allocation4 + $0x1], 1 }
 0x21c   :  { %591 = vsyncpa [#allocation7], 1 }
 0x21d   :  { %592 = vsyncpa [#allocation5], 1 }
 0x21e   :  { %594 = vsyncpa [#allocation5 + $0x1], 1 }

</bundles_post_ra>
